<compile_context>
chip_gen: v5e
topology: v5e:2x2
jax: 0.10.0
libtpu: 0.0.40
codegen_flags: <defaults>
</compile_context>

<pallas_src>
import functools
import math

import jax
import jax.numpy as jnp
from jax.experimental import pallas as pl
from jax.experimental.pallas import tpu as pltpu


def hybonet_kernel(r_ref, u_ref, scale_ref, h_ref, wt_ref, rb_ref, t_ref, o_ref):
    """Per-example lorentz_linear + Lorentz inner-product (cinner) scoring."""
    del r_ref, u_ref                       # consumed only by the index_maps
    scale = scale_ref[0]                   # f32 scalar from SMEM

    h = h_ref[0]                           # (1, D)   head embedding row
    wt = wt_ref[0]                         # (D, D)   relation matrix, already W^T
    rb = rb_ref[0]                         # (1, D)   relation bias
    t = t_ref[0]                           # (Kp, D)  candidate tails (lane-padded)

    # x = h @ W^T  (accumulate in f32 even when inputs are bf16)
    x = jnp.dot(h, wt, preferred_element_type=jnp.float32)           # (1, D)

    # time component from x[..., 0] BEFORE the bias add (matches torch order).
    time = jax.nn.sigmoid(x[:, 0:1]) * scale + 1.1                    # (1, 1)

    x = x + rb                                                        # (1, D) f32

    # spatial squared norm without a masked reduce: sum(x^2) - x0^2
    x0 = x[:, 0:1]
    sq = jnp.sum(x * x, axis=-1, keepdims=True) - x0 * x0             # (1, 1)
    sq = jnp.maximum(sq, 1e-30)            # guard: all-zero spatial part

    # x_narrow / sqrt(sq / (time^2 - 1))  ==  x_narrow * rsqrt(sq / (time^2 - 1))
    inv = jax.lax.rsqrt(sq / (time * time - 1.0))                     # (1, 1)
    xn = x * inv                                                      # (1, D)

    # Lorentz head vector with time pre-negated so cinner becomes a plain dot.
    D = x.shape[-1]
    is_time = jax.lax.broadcasted_iota(jnp.int32, (1, D), 1) == 0
    h_lor = jnp.where(is_time, -time, xn)                             # (1, D)

    # score_k = cinner(h, t_k) = -time * t_k0 + sum_i xn_i * t_ki
    score = jax.lax.dot_general(
        h_lor.astype(t.dtype), t,
        (((1,), (1,)), ((), ())),
        preferred_element_type=jnp.float32)                           # (1, Kp)

    o_ref[...] = score.reshape(o_ref.shape)


@functools.partial(jax.jit, static_argnames=("margin", "compute_dtype"))
def hybonet_forward(params, u_idx, r_idx, v_idx, *, margin,
                    compute_dtype=jnp.float32):
    emb = params['emb_entity']            # (E, D)
    rel_bias = params['relation_bias']    # (R, D)
    rel_w = params['relation_transform']  # (R, D, D)
    scale = params['scale']               # ()
    bias_head = params['bias_head']       # (E,)
    bias_tail = params['bias_tail']       # (E,)

    _, D = emb.shape
    B = u_idx.shape[0]
    K = v_idx.shape[1]
    Kp = max(128, ((K + 127) // 128) * 128)        # lane-dense output width

    emb_c = emb.astype(compute_dtype)
    emb3 = emb_c[:, None, :]                                   # (E, 1, D)
    wt = jnp.swapaxes(rel_w, -1, -2).astype(compute_dtype)     # (R, D, D) = W^T
    rb3 = rel_bias[:, None, :].astype(compute_dtype)           # (R, 1, D)

    # Tail gather stays in XLA glue (arbitrary per-row indices); pad K -> Kp.
    t = emb_c[v_idx]                                           # (B, K, D)
    t = jnp.pad(t, ((0, 0), (0, Kp - K), (0, 0)))              # (B, Kp, D)

    r_i = r_idx.astype(jnp.int32)
    u_i = u_idx.astype(jnp.int32)
    scale_arr = jnp.reshape(scale, (1,)).astype(jnp.float32)

    grid_spec = pltpu.PrefetchScalarGridSpec(
        num_scalar_prefetch=2,            # r_idx, u_idx -> SMEM, feed index_maps
        grid=(B,),
        in_specs=[
            pl.BlockSpec(memory_space=pltpu.MemorySpace.SMEM),        # scale
            pl.BlockSpec((1, 1, D), lambda b, r, u: (u[b], 0, 0)),    # head row
            pl.BlockSpec((1, D, D), lambda b, r, u: (r[b], 0, 0)),    # W^T row
            pl.BlockSpec((1, 1, D), lambda b, r, u: (r[b], 0, 0)),    # rel bias
            pl.BlockSpec((1, Kp, D), lambda b, r, u: (b, 0, 0)),      # tails
        ],
        out_specs=pl.BlockSpec((1, 1, Kp), lambda b, r, u: (b, 0, 0)),
    )

    score = pl.pallas_call(
        hybonet_kernel,
        out_shape=jax.ShapeDtypeStruct((B, 1, Kp), jnp.float32),
        grid_spec=grid_spec,
        compiler_params=pltpu.CompilerParams(
            dimension_semantics=("parallel",)),
    )(r_i, u_i, scale_arr, emb3, wt, rb3, t)

    score = score[:, 0, :K]                                    # (B, K)

    # margin / bias epilogue fused by XLA outside the kernel.
    return (margin + 2.0 * score
            + bias_head[u_idx][:, None] + bias_tail[v_idx])


def hybonet_reference(params, u_idx, r_idx, v_idx, *, margin):
    """Pure-JAX reference mirroring the PyTorch forward, for verification."""
    emb = params['emb_entity']
    h = emb[u_idx]                                    # (B, D)
    t = emb[v_idx]                                    # (B, K, D)
    rb = params['relation_bias'][r_idx]               # (B, D)
    w = params['relation_transform'][r_idx]           # (B, D, D)
    scale = params['scale']

    x = jnp.einsum('bd,bid->bi', h, w)                # h @ W^T
    time = jax.nn.sigmoid(x[:, :1]) * scale + 1.1
    x = x + rb
    xn = x[:, 1:]
    xn = xn / jnp.sqrt((xn * xn).sum(-1, keepdims=True) / (time * time - 1.0))
    h2 = jnp.concatenate([time, xn], axis=-1)         # (B, D)
    hs = h2.at[:, 0].multiply(-1.0)                   # negate time comp (cinner)
    score = jnp.einsum('bd,bkd->bk', hs, t)           # (B, K)
    return (margin + 2.0 * score
            + params['bias_head'][u_idx][:, None]
            + params['bias_tail'][v_idx])


def init_params(key, n_entities, n_relations, dim, max_scale):
    k_emb, k_rel = jax.random.split(key, 2)
    # Entity embeddings on the Lorentz manifold: spatial ~ N(0, 1/sqrt(dim)),
    # time = sqrt(1 + ||spatial||^2)   (curvature 1 hyperboloid)
    spatial = jax.random.normal(k_emb, (n_entities, dim - 1),
                                jnp.float32) / math.sqrt(dim)
    time = jnp.sqrt(1.0 + jnp.sum(spatial * spatial, -1, keepdims=True))
    emb = jnp.concatenate([time, spatial], axis=-1)   # (E, D)

    # kaiming_uniform_ on (R, D, D): fan_in = D * D, bound = sqrt(6 / fan_in)
    bound = math.sqrt(6.0 / (dim * dim))
    rel_w = jax.random.uniform(k_rel, (n_relations, dim, dim), jnp.float32,
                               minval=-bound, maxval=bound)

    return {
        'emb_entity': emb,
        'relation_bias': jnp.zeros((n_relations, dim), jnp.float32),
        'relation_transform': rel_w,
        'scale': jnp.asarray(max_scale, jnp.float32),
        'bias_head': jnp.zeros((n_entities,), jnp.float32),
        'bias_tail': jnp.zeros((n_entities,), jnp.float32),
    }


if __name__ == "__main__":
    E, R, D = 64, 8, 32        # entities, relations, embedding dim
    B, K = 8, 16               # batch size, candidate tails per example
    MAX_SCALE, MARGIN = 2.5, 8.0

    key = jax.random.PRNGKey(0)
    k_p, k_u, k_r, k_v = jax.random.split(key, 4)

    params = init_params(k_p, E, R, D, MAX_SCALE)
    u_idx = jax.random.randint(k_u, (B,), 0, E)
    r_idx = jax.random.randint(k_r, (B,), 0, R)
    v_idx = jax.random.randint(k_v, (B, K), 0, E)

    ref = hybonet_reference(params, u_idx, r_idx, v_idx, margin=MARGIN)

    # f32 path (v5e-friendly): tight check against the pure-JAX reference.
    out = hybonet_forward(params, u_idx, r_idx, v_idx, margin=MARGIN)
    out = jax.block_until_ready(out)
    assert out.shape == (B, K)
    assert jnp.allclose(out, ref, rtol=1e-4, atol=1e-4), (
        f"max abs err {jnp.max(jnp.abs(out - ref))}")

    # bf16 streaming path (v6e / v7x): halves HBM/VMEM traffic; loose check.
    out_bf16 = hybonet_forward(params, u_idx, r_idx, v_idx, margin=MARGIN,
                               compute_dtype=jnp.bfloat16)
    out_bf16 = jax.block_until_ready(out_bf16)
    assert out_bf16.shape == (B, K)
    assert jnp.allclose(out_bf16, ref, rtol=1e-1, atol=1.0), (
        f"bf16 max abs err {jnp.max(jnp.abs(out_bf16 - ref))}")

    print("KERNEL_OK")
</pallas_src>

<mosaic_0001>
module attributes {stable_mosaic.version = 11 : i64} {
  func.func @hybonet_kernel(%arg0: i32, %arg1: memref<8xi32, #tpu.memory_space<smem>>, %arg2: memref<8xi32, #tpu.memory_space<smem>>, %arg3: memref<1xf32, #tpu.memory_space<smem>>, %arg4: memref<1x1x32xf32, #tpu.memory_space<vmem>>, %arg5: memref<1x32x32xf32, #tpu.memory_space<vmem>>, %arg6: memref<1x1x32xf32, #tpu.memory_space<vmem>>, %arg7: memref<1x128x32xf32, #tpu.memory_space<vmem>>, %arg8: memref<1x1x128xf32, #tpu.memory_space<vmem>>) attributes {dimension_semantics = [#tpu.dimension_semantics<parallel>], iteration_bounds = array<i64: 8>, scalar_prefetch = 2 : i64, scratch_operands = 0 : i64, tpu.core_type = #tpu.core_type<tc>, window_params = [{transform_indices = @transform_0, window_bounds = array<i64: 1>}, {transform_indices = @transform_1, window_bounds = array<i64: 1, 1, 32>}, {transform_indices = @transform_2, window_bounds = array<i64: 1, 32, 32>}, {transform_indices = @transform_3, window_bounds = array<i64: 1, 1, 32>}, {transform_indices = @transform_4, window_bounds = array<i64: 1, 128, 32>}, {transform_indices = @transform_5, window_bounds = array<i64: 1, 1, 128>}]} {
    %c0 = arith.constant 0 : index
    %0 = memref.load %arg3[%c0] : memref<1xf32, #tpu.memory_space<smem>>
    %c0_0 = arith.constant 0 : index
    %c0_1 = arith.constant 0 : index
    %c0_2 = arith.constant 0 : index
    %1 = vector.load %arg4[%c0_0, %c0_1, %c0_2] : memref<1x1x32xf32, #tpu.memory_space<vmem>>, vector<1x1x32xf32>
    %2 = vector.shape_cast %1 : vector<1x1x32xf32> to vector<1x32xf32>
    %c0_3 = arith.constant 0 : index
    %c0_4 = arith.constant 0 : index
    %c0_5 = arith.constant 0 : index
    %3 = vector.load %arg5[%c0_3, %c0_4, %c0_5] : memref<1x32x32xf32, #tpu.memory_space<vmem>>, vector<1x32x32xf32>
    %4 = vector.shape_cast %3 : vector<1x32x32xf32> to vector<32x32xf32>
    %c0_6 = arith.constant 0 : index
    %c0_7 = arith.constant 0 : index
    %c0_8 = arith.constant 0 : index
    %5 = vector.load %arg6[%c0_6, %c0_7, %c0_8] : memref<1x1x32xf32, #tpu.memory_space<vmem>>, vector<1x1x32xf32>
    %6 = vector.shape_cast %5 : vector<1x1x32xf32> to vector<1x32xf32>
    %c0_9 = arith.constant 0 : index
    %c0_10 = arith.constant 0 : index
    %c0_11 = arith.constant 0 : index
    %7 = vector.load %arg7[%c0_9, %c0_10, %c0_11] : memref<1x128x32xf32, #tpu.memory_space<vmem>>, vector<1x128x32xf32>
    %8 = vector.shape_cast %7 : vector<1x128x32xf32> to vector<128x32xf32>
    %cst = arith.constant dense<0.000000e+00> : vector<1x32xf32>
    %9 = tpu.matmul %2, %4, %cst {dimension_numbers = #tpu.dot_dimension_numbers<[1], [0], [0], [1], [0, 0, 1, 1], [], []>} : vector<1x32xf32>, vector<32x32xf32>, vector<1x32xf32> -> vector<1x32xf32>
    %10 = vector.extract_strided_slice %9 {offsets = [0, 0], sizes = [1, 1], strides = [1, 1]} : vector<1x32xf32> to vector<1x1xf32>
    %11 = arith.negf %10 : vector<1x1xf32>
    %12 = math.exp %11 : vector<1x1xf32>
    %cst_12 = arith.constant 1.000000e+00 : f32
    %13 = vector.broadcast %cst_12 : f32 to vector<1x1xf32>
    %14 = arith.addf %13, %12 : vector<1x1xf32>
    %15 = arith.divf %13, %14 : vector<1x1xf32>
    %16 = vector.broadcast %0 : f32 to vector<1x1xf32>
    %17 = arith.mulf %15, %16 : vector<1x1xf32>
    %cst_13 = arith.constant 1.100000e+00 : f32
    %18 = vector.broadcast %cst_13 : f32 to vector<1x1xf32>
    %19 = arith.addf %17, %18 : vector<1x1xf32>
    %20 = arith.addf %9, %6 : vector<1x32xf32>
    %21 = vector.extract_strided_slice %20 {offsets = [0, 0], sizes = [1, 1], strides = [1, 1]} : vector<1x32xf32> to vector<1x1xf32>
    %22 = arith.mulf %20, %20 : vector<1x32xf32>
    %cst_14 = arith.constant dense<0.000000e+00> : vector<1xf32>
    %23 = vector.multi_reduction <add>, %22, %cst_14 [1] : vector<1x32xf32> to vector<1xf32>
    %24 = vector.shape_cast %23 : vector<1xf32> to vector<1x1xf32>
    %25 = arith.mulf %21, %21 : vector<1x1xf32>
    %26 = arith.subf %24, %25 : vector<1x1xf32>
    %cst_15 = arith.constant 1.000000e-30 : f32
    %27 = vector.broadcast %cst_15 : f32 to vector<1x1xf32>
    %28 = arith.maximumf %26, %27 : vector<1x1xf32>
    %29 = arith.mulf %19, %19 : vector<1x1xf32>
    %cst_16 = arith.constant 1.000000e+00 : f32
    %30 = vector.broadcast %cst_16 : f32 to vector<1x1xf32>
    %31 = arith.subf %29, %30 : vector<1x1xf32>
    %32 = arith.divf %28, %31 : vector<1x1xf32>
    %33 = math.rsqrt %32 : vector<1x1xf32>
    %34 = vector.broadcast %33 : vector<1x1xf32> to vector<1x32xf32>
    %35 = arith.mulf %20, %34 : vector<1x32xf32>
    %36 = tpu.iota {dimensions = array<i32: 1>} : vector<1x32xi32>
    %c0_i32 = arith.constant 0 : i32
    %37 = vector.broadcast %c0_i32 : i32 to vector<1x32xi32>
    %38 = arith.cmpi eq, %36, %37 : vector<1x32xi32>
    %cst_17 = arith.constant 0.000000e+00 : f32
    %39 = vector.broadcast %cst_17 : f32 to vector<1x1xf32>
    %40 = arith.subf %39, %19 : vector<1x1xf32>
    %41 = vector.shape_cast %40 : vector<1x1xf32> to vector<1x1xf32>
    %42 = vector.broadcast %41 : vector<1x1xf32> to vector<1x32xf32>
    %43 = arith.select %38, %42, %35 : vector<1x32xi1>, vector<1x32xf32>
    %cst_18 = arith.constant dense<0.000000e+00> : vector<1x128xf32>
    %44 = tpu.matmul %43, %8, %cst_18 {dimension_numbers = #tpu.dot_dimension_numbers<[1], [1], [0], [0], [0, 0, 1, 0], [], []>} : vector<1x32xf32>, vector<128x32xf32>, vector<1x128xf32> -> vector<1x128xf32>
    %45 = vector.shape_cast %44 : vector<1x128xf32> to vector<1x1x128xf32>
    %c0_19 = arith.constant 0 : index
    %c0_20 = arith.constant 0 : index
    %c0_21 = arith.constant 0 : index
    %46 = vector.load %arg8[%c0_19, %c0_20, %c0_21] : memref<1x1x128xf32, #tpu.memory_space<vmem>>, vector<1x1x128xf32>
    tpu.vector_store %arg8[%c0_19, %c0_20, %c0_21], %45 {strides = array<i32>} : memref<1x1x128xf32, #tpu.memory_space<vmem>>, vector<1x1x128xf32>,
    return
  }
  func.func @transform_0(%arg0: i32, %arg1: memref<8xi32, #tpu.memory_space<smem>>, %arg2: memref<8xi32, #tpu.memory_space<smem>>) -> i32 {
    %c0_i32 = arith.constant 0 : i32
    %c0_i32_0 = arith.constant 0 : i32
    return %c0_i32 : i32
  }
  func.func @transform_1(%arg0: i32, %arg1: memref<8xi32, #tpu.memory_space<smem>>, %arg2: memref<8xi32, #tpu.memory_space<smem>>) -> (i32, i32, i32) {
    %0 = arith.index_cast %arg0 : i32 to index
    %1 = memref.load %arg2[%0] : memref<8xi32, #tpu.memory_space<smem>>
    %c0_i32 = arith.constant 0 : i32
    %c0_i32_0 = arith.constant 0 : i32
    %c0_i32_1 = arith.constant 0 : i32
    return %1, %c0_i32, %c0_i32_0 : i32, i32, i32
  }
  func.func @transform_2(%arg0: i32, %arg1: memref<8xi32, #tpu.memory_space<smem>>, %arg2: memref<8xi32, #tpu.memory_space<smem>>) -> (i32, i32, i32) {
    %0 = arith.index_cast %arg0 : i32 to index
    %1 = memref.load %arg1[%0] : memref<8xi32, #tpu.memory_space<smem>>
    %c0_i32 = arith.constant 0 : i32
    %c0_i32_0 = arith.constant 0 : i32
    %c0_i32_1 = arith.constant 0 : i32
    return %1, %c0_i32, %c0_i32_0 : i32, i32, i32
  }
  func.func @transform_3(%arg0: i32, %arg1: memref<8xi32, #tpu.memory_space<smem>>, %arg2: memref<8xi32, #tpu.memory_space<smem>>) -> (i32, i32, i32) {
    %0 = arith.index_cast %arg0 : i32 to index
    %1 = memref.load %arg1[%0] : memref<8xi32, #tpu.memory_space<smem>>
    %c0_i32 = arith.constant 0 : i32
    %c0_i32_0 = arith.constant 0 : i32
    %c0_i32_1 = arith.constant 0 : i32
    return %1, %c0_i32, %c0_i32_0 : i32, i32, i32
  }
  func.func @transform_4(%arg0: i32, %arg1: memref<8xi32, #tpu.memory_space<smem>>, %arg2: memref<8xi32, #tpu.memory_space<smem>>) -> (i32, i32, i32) {
    %c0_i32 = arith.constant 0 : i32
    %c0_i32_0 = arith.constant 0 : i32
    %c0_i32_1 = arith.constant 0 : i32
    return %arg0, %c0_i32, %c0_i32_0 : i32, i32, i32
  }
  func.func @transform_5(%arg0: i32, %arg1: memref<8xi32, #tpu.memory_space<smem>>, %arg2: memref<8xi32, #tpu.memory_space<smem>>) -> (i32, i32, i32) {
    %c0_i32 = arith.constant 0 : i32
    %c0_i32_0 = arith.constant 0 : i32
    %c0_i32_1 = arith.constant 0 : i32
    return %arg0, %c0_i32, %c0_i32_0 : i32, i32, i32
  }
}

</mosaic_0001>

<bundles_post_ra>
// kernel: hybonet_forward.1
= control target key start
LH: loop header
LB: loop body
LE: loop exit
PB: predicated region body
PF: predicated region fallthrough
CT: control target
= control target key end

     0   :  { %s663_s30 = smov [#allocation3]   ;;  %s664_s8 = smov [#allocation4]   ;;  %s793_s0 = inlined_call_operand.vmem [shape: s32[8], index: 0, kind: input, shape index: {}]   ;;  %s794_s3 = inlined_call_operand.vmem [shape: f32[64,1,32], index: 3, kind: input, shape index: {}]   ;;  %s795_s4 = inlined_call_operand.vmem [shape: f32[8,32,32], index: 4, kind: input, shape index: {}]   ;;  %s796_s5 = inlined_call_operand.vmem [shape: f32[8,1,32], index: 5, kind: input, shape index: {}]   ;;  %s797_s6 = inlined_call_operand.vmem [shape: f32[8,128,32], index: 6, kind: input, shape index: {}]   ;;  %s798_s7 = inlined_call_operand.vmem [shape: f32[8,1,128], index: 7, kind: output, shape index: {}]   ;;  %s799_s1 = inlined_call_operand.vmem [shape: s32[8], index: 1, kind: input, shape index: {}]   ;;  %s800_s2 = inlined_call_operand.<no memory space> [shape: f32[1], index: 2, kind: input, shape index: {}]  }
   0x1   :  { %s13_s26 = sshll.u32 %s793_s0, 4  ;;  %s18_s29 = sshll.u32 %s799_s1, 4  ;;  %s14_s26 = int_to_ptr.vmem [resolvable:$true] %s13_s26  ;;  %s19_s29 = int_to_ptr.vmem [resolvable:$true] %s18_s29 }
   0x2   :  { %16 = dma.vmem_to_smem %s14_s26, 16, %s663_s30, [#allocation2] }
   0x3   :  { %21 = dma.vmem_to_smem %s19_s29, 16, %s664_s8, [#allocation2] }
   0x4   :  { %22 = sst [smem:[#allocation5]] %s800_s2 }
   0x5   :  { %657 = dma.done.wait [#allocation2], 32 }
   0x6   :  { %658 = vsyncadd [#allocation2], 4294967264 }
   0x7   :  { %25 = sfence }
   0x8   :  { %s715_s11 = smov 0  }
   0x9 LB: > { %s721_s0 = sadd.s32 4294967295, %s661_s11   ;;  %p579_p0 = scmp.ge.s32.totalorder %s661_s11, 1  ;;  %s661_s11 = sphi %s715_s11, %s31_s11  }
   0xa   : > { %p241_p1 = scmp.lt.s32.totalorder %s661_s11, 9 }
   0xc   : > { %p242_p2 = pnand %p579_p0, %p241_p1 }
   0xd   : > { %s286_s1 = sld [smem:[#allocation3 + %s721_s0]] (!%p242_p2)  ;;  %p298_p6 = scmp.lt.s32.totalorder (!%p242_p2), %s721_s0, 7 }
   0xe   : > { %245 = sbr.rel (%p242_p2) target bundleno = 548 (0x224), region = 40  ;;  %s281_s2 = sld [smem:[#allocation4 + %s721_s0]] (!%p242_p2) }
   0xf   : > { %s293_s19 = sld [smem:[#allocation3 + %s721_s0]] (!%p242_p2) }
  0x10   : > { %s306_s23 = sld [smem:[#allocation5]] (!%p242_p2) }
  0x13   : > { %p287_p3 = scmp.lt.s32.totalorder %s286_s1, 7  ;;  %vm329_vm0 = vcmask 261120   ;;  %v665_v5 = vmov 0   ;;  %vm377_vm1 = vcmask 253952   ;;  %s808_s0 = smov (!%p298_p6, %s721_s0), 7 }
  0x14   : > { %p282_p4 = scmp.lt.s32.totalorder %s281_s2, 63  ;;  %620 = vset.pattern.permute.xlu1 %v665_v5  ;;  %619 = vset.pattern.permute.xlu0 %v665_v5  ;;  %s607_s24 = sshll.u32 %s808_s0, 7 }
  0x15   : > { %s802_s1 = smov (!%p287_p3, %s286_s1), 7  ;;  %p294_p5 = scmp.lt.s32.totalorder %s293_s19, 7 }
  0x16   : > { %s804_s2 = smov (!%p282_p4, %s281_s2), 63  ;;  %s606_s12 = sshll.u32 %s802_s1, 5  ;;  %v372_v22 = vstv %s306_s23 }
  0x17   : > { %s291_s15 = scalar_lea.vmem %s795_s4, %s606_s12  ;;  %s284_s18 = scalar_lea.vmem %s794_s3, %s804_s2 }
  0x18   : > { %v311_v0 = vld [vmem:[%s291_s15 + $0x18] sm:$0xff]  ;;  %v310_v1 = vld [vmem:[%s291_s15 + $0x10] sm:$0xff]  ;;  %v309_v2 = vld [vmem:[%s291_s15 + $0x8] sm:$0xff]  ;;  %s806_s19 = smov (!%p294_p5, %s293_s19), 7  ;;  %s750_s27 = scalar_lea.vmem %s797_s6, %s607_s24 }
  0x19   : > { %345 = vmatpush.msra.mxu0 %v311_v0  ;;  %v308_v3 = vld [vmem:[%s291_s15] sm:$0xff]  ;;  %s296_s22 = scalar_lea.vmem %s796_s5, %s806_s19  ;;  %v328_v34 = vld [vmem:[%s750_s27 + $0x78] sm:$0xff]  ;;  %v327_v37 = vld [vmem:[%s750_s27 + $0x70] sm:$0xff]  ;;  %s305_s30 = scalar_lea.vmem %s798_s7, %s808_s0 }
  0x1a   : > { %v307_v4 = vld [vmem:[%s284_s18] sm:$0x1]  ;;  %587 = vmatpush.xpose.msk.msra.mxu1 %vm329_vm0, %v328_v34  ;;  %v326_v43 = vld [vmem:[%s750_s27 + $0x68] sm:$0xff]  ;;  %v324_v48 = vld [vmem:[%s750_s27 + $0x58] sm:$0xff] }
  0x1b   : > { %346 = vmatpush.msra.mxu0 %v310_v1  ;;  %v312_v6 = vld [vmem:[%s296_s22] sm:$0x1]  ;;  %v323_v51 = vld [vmem:[%s750_s27 + $0x50] sm:$0xff]  ;;  %v322_v54 = vld [vmem:[%s750_s27 + $0x48] sm:$0xff] }
  0x1c   : > { %v325_v47 = vld [vmem:[%s750_s27 + $0x60] sm:$0xff]  ;;  %v320_v59 = vld [vmem:[%s750_s27 + $0x38] sm:$0xff]  ;;  %v319_v60 = vld [vmem:[%s750_s27 + $0x30] sm:$0xff] }
  0x1d   : > { %347 = vmatpush.msra.mxu0 %v309_v2  ;;  %v321_v57 = vld [vmem:[%s750_s27 + $0x40] sm:$0xff]  ;;  %v318_v61 = vld [vmem:[%s750_s27 + $0x28] sm:$0xff]  ;;  %v316_v63 = vld [vmem:[%s750_s27 + $0x18] sm:$0xff] }
  0x1e   : > { %588 = vmatpush.xpose.msk.msra.mxu1 %vm329_vm0, %v327_v37  ;;  %v317_v62 = vld [vmem:[%s750_s27 + $0x20] sm:$0xff]  ;;  %v315_v0 = vld [vmem:[%s750_s27 + $0x10] sm:$0xff]  ;;  %v314_v1 = vld [vmem:[%s750_s27 + $0x8] sm:$0xff] }
  0x1f   : > { %348 = vmatpush.msra.mxu0 %v308_v3  ;;  %v313_v2 = vld [vmem:[%s750_s27] sm:$0xff]  ;;  %v416_v3 = vlaneseq }
  0x20   : > { %584 = vmatmul.msk.f32.vlgmr.msra.gmra.mxu0 %vm329_vm0, %v307_v4 }
  0x21   : > { %v417_v4 = vand.u32 127, %v416_v3 }
  0x22   : > { %589 = vmatpush.xpose.msk.msra.mxu1 %vm329_vm0, %v326_v43 }
  0x23   : > { %vm418_vm13 = vcmp.eq.s32.totalorder %v417_v4, 0 }
  0x26   : > { %590 = vmatpush.xpose.msk.msra.mxu1 %vm329_vm0, %v325_v47 }
  0x2a   : > { %591 = vmatpush.xpose.msk.msra.mxu1 %vm329_vm0, %v324_v48 }
  0x2e   : > { %592 = vmatpush.xpose.msk.msra.mxu1 %vm329_vm0, %v323_v51 }
  0x32   : > { %593 = vmatpush.xpose.msk.msra.mxu1 %vm329_vm0, %v322_v54 }
  0x36   : > { %594 = vmatpush.xpose.msk.msra.mxu1 %vm329_vm0, %v321_v57 }
  0x3a   : > { %595 = vmatpush.xpose.msk.msra.mxu1 %vm329_vm0, %v320_v59 }
  0x3e   : > { %596 = vmatpush.xpose.msk.msra.mxu1 %vm329_vm0, %v319_v60 }
  0x42   : > { %597 = vmatpush.xpose.msk.msra.mxu1 %vm329_vm0, %v318_v61 }
  0x46   : > { %598 = vmatpush.xpose.msk.msra.mxu1 %vm329_vm0, %v317_v62 }
  0x4a   : > { %599 = vmatpush.xpose.msk.msra.mxu1 %vm329_vm0, %v316_v63 }
  0x4e   : > { %600 = vmatpush.xpose.msk.msra.mxu1 %vm329_vm0, %v315_v0 }
  0x52   : > { %601 = vmatpush.xpose.msk.msra.mxu1 %vm329_vm0, %v314_v1 }
  0x56   : > { %602 = vmatpush.xpose.msk.msra.mxu1 %vm329_vm0, %v313_v2 }
  0x9d   : > { %v350_v7 = vpop.f32.mrf.mxu0 }
  0x9e   : > { %v585_v8 = vmul.f32 -1.442695, %v350_v7  ;;  %v738_v9 = vadd.f32 %v350_v7, %v312_v6 }
  0xa0   : > { %621 = vpow2.f32 %v585_v8  ;;  %v376_v10 = vmul.f32 %v738_v9, %v738_v9 }
  0xa2   : > { %v378_v11 = vsel %vm377_vm1, %v376_v10, 0.0 }
  0xa3   : > { %379 = vadd.xlane.f32.xlu0 %v378_v11 }
  0xa6   : > { %v622_v12 = vpop.eup %621 }
  0xa7   : > { %v356_v13 = vadd.f32 1.0, %v622_v12 }
  0xa9   : > { %623 = vrcp.f32 %v356_v13  ;;  %v368_v17 = vand.u32 2147483648, %v356_v13  ;;  %v366_v19 = vand.u32 2147483647, %v356_v13  ;;  %vm362_vm3 = vweird.f32 %v356_v13 }
  0xab   : > { %v369_v21 = vor.u32 1.1754944e-38, %v368_v17  ;;  %vm367_vm5 = vcmp.eq.f32.partialorder %v366_v19, 8.507059e+37 }
  0xaf   : > { %v624_v14 = vpop.eup %623 }
  0xb0   : > { %v358_v15 = vmul.f32 %v624_v14, %v356_v13  ;;  %vm363_vm2 = vweird.f32 %v624_v14 }
  0xb1   : > { %vm364_vm4 = vmor %vm362_vm3, %vm363_vm2 }
  0xb2   : > { %v359_v16 = vsub.f32 1.0, %v358_v15 }
  0xb4   : > { %v360_v18 = vmul.f32 %v624_v14, %v359_v16 }
  0xb6   : > { %v361_v20 = vadd.f32 %v624_v14, %v360_v18 }
  0xb8   : > { %v365_v23 = vsel %vm364_vm4, %v624_v14, %v361_v20 }
  0xb9   : > { %v370_v24 = vsel %vm367_vm5, %v369_v21, %v365_v23 }
  0xba   : > { %v373_v25 = vmul.f32 %v372_v22, %v370_v24 }
  0xbc   : > { %v374_v26 = vadd.f32 1.1, %v373_v25 }
  0xbe   : > { %v419_v27 = vsub.f32 0.0, %v374_v26  ;;  %v383_v28 = vmul.f32 %v374_v26, %v374_v26 }
  0xc0   : > { %422 = vperm.xlu1 %620, %v419_v27   ;;  %v586_v29 = vadd.f32 -1.0, %v383_v28 }
  0xc2   : > { %625 = vrcp.f32 %v586_v29  ;;  %v396_v36 = vand.u32 2147483648, %v586_v29  ;;  %vm390_vm7 = vweird.f32 %v586_v29  ;;  %v394_v38 = vand.u32 2147483647, %v586_v29 }
  0xc4   : > { %v397_v42 = vor.u32 1.1754944e-38, %v396_v36  ;;  %vm395_vm9 = vcmp.eq.f32.partialorder %v394_v38, 8.507059e+37 }
  0xc8   : > { %v626_v30 = vpop.eup %625 }
  0xc9   : > { %v386_v31 = vmul.f32 %v626_v30, %v586_v29  ;;  %vm391_vm6 = vweird.f32 %v626_v30 }
  0xca   : > { %vm392_vm8 = vmor %vm390_vm7, %vm391_vm6 }
  0xcb   : > { %v387_v32 = vsub.f32 1.0, %v386_v31 }
  0xcd   : > { %v388_v33 = vmul.f32 %v626_v30, %v387_v32 }
  0xcf   : > { %v389_v35 = vadd.f32 %v626_v30, %v388_v33 }
  0xd1   : > { %v393_v41 = vsel %vm392_vm8, %v626_v30, %v389_v35 }
  0xd2   : > { %v398_v45 = vsel %vm395_vm9, %v397_v42, %v393_v41 }
 0x116   : > { %v380_v39 = vpop.xlane.xlu0 %379 }
 0x117   : > { %v381_v40 = vsub.f32 %v380_v39, %v376_v10 }
 0x119   : > { %v382_v44 = vmax.f32 %v381_v40, 1e-30 }
 0x11b   : > { %v399_v46 = vmul.f32 %v398_v45, %v382_v44 }
 0x11d   : > { %627 = vrsqrt.f32 %v399_v46  ;;  %vm406_vm11 = vweird.f32 %v399_v46 }
 0x123   : > { %v628_v49 = vpop.eup %627 }
 0x124   : > { %v401_v50 = vmul.f32 %v628_v49, %v399_v46  ;;  %vm407_vm10 = vweird.f32 %v628_v49 }
 0x125   : > { %vm408_vm12 = vmor %vm406_vm11, %vm407_vm10 }
 0x126   : > { %v402_v52 = vmul.f32 %v628_v49, %v401_v50 }
 0x128   : > { %v403_v53 = vmul.f32 0.5, %v402_v52 }
 0x12a   : > { %v404_v55 = vsub.f32 1.5, %v403_v53 }
 0x12c   : > { %v405_v56 = vmul.f32 %v628_v49, %v404_v55 }
 0x12e   : > { %v409_v58 = vsel %vm408_vm12, %v628_v49, %v405_v56 }
 0x12f   : > { %412 = vperm.xlu0 %619, %v409_v58  }
 0x132   : > { %v423_v7 = vpop.permute.xlu1 %422 }
 0x1a1   : > { %v413_v5 = vpop.permute.xlu0 %412 }
 0x1a2   : > { %v415_v6 = vmul.f32 %v413_v5, %v738_v9 }
 0x1a4   : > { %v425_v8 = vsel %vm418_vm13, %v423_v7, %v415_v6 }
 0x1a5   : > { %603 = vmatmul.msk.f32.vlgmr.msra.gmra.mxu1 %vm329_vm0, %v425_v8 }
 0x222   : > { %v494_v10 = vpop.f32.mrf.mxu1 }
 0x223   : > { %497 = vst [vmem:[%s305_s30] sm:$0x1] %v494_v10 }
 0x224 PF: > { %s31_s11 = sadd.s32 1, %s661_s11  }
 0x225   : > { %p28_p7 = scmp.ge.s32.totalorder %s31_s11, 10  }
 0x227   :  { %30 = sbr.rel (!%p28_p7) target bundleno = 9 (0x9), region = 79 }

</bundles_post_ra>
